<compile_context>
chip_gen: v5e
topology: v5e:2x2
jax: 0.10.0
libtpu: 0.0.40
codegen_flags: <defaults>
</compile_context>

<pallas_src>
import jax
import jax.numpy as jnp
from jax.experimental import pallas as pl
from jax.experimental.pallas import tpu as pltpu

_LANE = 1024                 # lane-dense last dim (multiple of 128)
_TILE_R = 1024               # rows per tile: 1024*1024*4B = 4 MiB per f32 buffer
_MIN_PALLAS_ELEMS = 1 << 18  # below this, plain XLA elementwise beats launch overhead


def _lastlayer_kernel(w_ref, b_ref, x_ref, o_ref):
    # w_ref / b_ref live in SMEM; x_ref / o_ref are (tile_r, LANE) VMEM tiles.
    # Compute in f32 (portable to v5e which has no bf16 VALU); the slab itself
    # stays in x's dtype in HBM/VMEM so DMA bytes are not inflated.
    w = w_ref[0, 0]
    b = b_ref[0, 0]
    o_ref[...] = (x_ref[...].astype(jnp.float32) * w + b).astype(o_ref.dtype)


def lastlayer_forward(x, weight, bias, *, min_pallas_elems=_MIN_PALLAS_ELEMS):
    """Pallas implementation of nn.Linear(1, 1) applied to x of shape [N, 1]."""
    orig_shape = x.shape
    orig_dtype = x.dtype
    n = x.size

    w = weight.reshape(()).astype(jnp.float32)
    b = bias.reshape(()).astype(jnp.float32)

    # ---- small-N fallback: fused XLA elementwise is strictly faster ----
    if n < min_pallas_elems:
        return (x.astype(jnp.float32) * w + b).astype(orig_dtype).reshape(orig_shape)

    # ---- flatten to a lane-dense 2-D slab ----
    flat = x.reshape(-1)
    rows = pl.cdiv(n, _LANE)
    padded_len = rows * _LANE
    aligned = padded_len == n
    if not aligned:
        # At most one lane row (<= 4 KiB) of pad; never a full tile.
        flat = jnp.pad(flat, (0, padded_len - n))
    x2d = flat.reshape(rows, _LANE)

    if rows >= _TILE_R:
        tile_r = _TILE_R          # divisible by 8 -> satisfies (8,128) rule
    else:
        tile_r = rows             # block == full array dim: no (8,128) requirement
    grid = (pl.cdiv(rows, tile_r),)  # ragged last row-block is masked by Pallas

    # Scalar params in SMEM.
    w_smem = w.reshape(1, 1)
    b_smem = b.reshape(1, 1)

    y2d = pl.pallas_call(
        _lastlayer_kernel,
        out_shape=jax.ShapeDtypeStruct((rows, _LANE), orig_dtype),
        grid_spec=pl.GridSpec(
            grid=grid,
            in_specs=[
                pl.BlockSpec(memory_space=pltpu.MemorySpace.SMEM),   # weight scalar
                pl.BlockSpec(memory_space=pltpu.MemorySpace.SMEM),   # bias scalar
                pl.BlockSpec((tile_r, _LANE), lambda i: (i, 0)),     # x tile
            ],
            out_specs=pl.BlockSpec((tile_r, _LANE), lambda i: (i, 0)),
        ),
        compiler_params=pltpu.CompilerParams(
            dimension_semantics=("parallel",),   # lets v7x shard tiles over 2 TCs
            vmem_limit_bytes=32 << 20,           # raise v5e's 16 MiB default; == v6e/v7x default
        ),
    )(w_smem, b_smem, x2d)

    if aligned:
        # Zero-copy: pure metadata reshape back to [N, 1].
        return y2d.reshape(orig_shape)
    # Unaligned: slice off the (<= 4 KiB) tail pad.
    return y2d.reshape(-1)[:n].reshape(orig_shape)


if __name__ == "__main__":
    key = jax.random.PRNGKey(0)
    k_x, k_w, k_b, k_x2, k_x3 = jax.random.split(key, 5)

    # Deterministic parameter init consistent with Linear(1, 1).
    weight = jax.random.uniform(k_w, (1, 1), dtype=jnp.float32, minval=-1.0, maxval=1.0)
    bias = jax.random.uniform(k_b, (1,), dtype=jnp.float32, minval=-1.0, maxval=1.0)

    # Case 1: tiny input [8, 1] -> exercises the small-N jnp fallback path.
    batch = 8
    x = jax.random.normal(k_x, (batch, 1), dtype=jnp.float32)
    y = jax.block_until_ready(lastlayer_forward(x, weight, bias))
    y_ref = x @ weight.T + bias
    assert y.shape == (batch, 1)
    assert jnp.allclose(y, y_ref, atol=1e-6, rtol=1e-6)

    # Case 2: lane-aligned input (4096 = 4 * 1024) -> zero-copy Pallas path
    # (no pad, no trailing slice).  min_pallas_elems=0 forces the kernel.
    batch2 = 4096
    x2 = jax.random.normal(k_x2, (batch2, 1), dtype=jnp.float32)
    y2 = jax.block_until_ready(
        lastlayer_forward(x2, weight, bias, min_pallas_elems=0))
    y2_ref = x2 @ weight.T + bias
    assert y2.shape == (batch2, 1)
    assert jnp.allclose(y2, y2_ref, atol=1e-6, rtol=1e-6)

    # Case 3: unaligned input (3000) -> <=4 KiB pad + slice Pallas path.
    batch3 = 3000
    x3 = jax.random.normal(k_x3, (batch3, 1), dtype=jnp.float32)
    y3 = jax.block_until_ready(
        lastlayer_forward(x3, weight, bias, min_pallas_elems=0))
    y3_ref = x3 @ weight.T + bias
    assert y3.shape == (batch3, 1)
    assert jnp.allclose(y3, y3_ref, atol=1e-6, rtol=1e-6)

    print("KERNEL_OK")
</pallas_src>

<mosaic_0001>
module attributes {stable_mosaic.version = 11 : i64} {
  func.func @_lastlayer_kernel(%arg0: i32, %arg1: memref<1x1xf32, #tpu.memory_space<smem>>, %arg2: memref<1x1xf32, #tpu.memory_space<smem>>, %arg3: memref<4x1024xf32, #tpu.memory_space<vmem>>, %arg4: memref<4x1024xf32, #tpu.memory_space<vmem>>) attributes {dimension_semantics = [#tpu.dimension_semantics<parallel>], iteration_bounds = array<i64: 1>, scalar_prefetch = 0 : i64, scratch_operands = 0 : i64, tpu.core_type = #tpu.core_type<tc>, window_params = [{transform_indices = @transform_0, window_bounds = array<i64: 1, 1>}, {transform_indices = @transform_1, window_bounds = array<i64: 1, 1>}, {transform_indices = @transform_2, window_bounds = array<i64: 4, 1024>}, {transform_indices = @transform_3, window_bounds = array<i64: 4, 1024>}]} {
    %c0 = arith.constant 0 : index
    %c0_0 = arith.constant 0 : index
    %0 = memref.load %arg1[%c0, %c0_0] : memref<1x1xf32, #tpu.memory_space<smem>>
    %c0_1 = arith.constant 0 : index
    %c0_2 = arith.constant 0 : index
    %1 = memref.load %arg2[%c0_1, %c0_2] : memref<1x1xf32, #tpu.memory_space<smem>>
    %c0_3 = arith.constant 0 : index
    %c0_4 = arith.constant 0 : index
    %2 = vector.load %arg3[%c0_3, %c0_4] : memref<4x1024xf32, #tpu.memory_space<vmem>>, vector<4x1024xf32>
    %3 = vector.broadcast %0 : f32 to vector<4x1024xf32>
    %4 = arith.mulf %2, %3 : vector<4x1024xf32>
    %5 = vector.broadcast %1 : f32 to vector<4x1024xf32>
    %6 = arith.addf %4, %5 : vector<4x1024xf32>
    %c0_5 = arith.constant 0 : index
    %c0_6 = arith.constant 0 : index
    %7 = vector.load %arg4[%c0_5, %c0_6] : memref<4x1024xf32, #tpu.memory_space<vmem>>, vector<4x1024xf32>
    tpu.vector_store %arg4[%c0_5, %c0_6], %6 {strides = array<i32>} : memref<4x1024xf32, #tpu.memory_space<vmem>>, vector<4x1024xf32>,
    return
  }
  func.func @transform_0(%arg0: i32) -> (i32, i32) {
    %c0_i32 = arith.constant 0 : i32
    %c0_i32_0 = arith.constant 0 : i32
    %c0_i32_1 = arith.constant 0 : i32
    return %c0_i32, %c0_i32_0 : i32, i32
  }
  func.func @transform_1(%arg0: i32) -> (i32, i32) {
    %c0_i32 = arith.constant 0 : i32
    %c0_i32_0 = arith.constant 0 : i32
    %c0_i32_1 = arith.constant 0 : i32
    return %c0_i32, %c0_i32_0 : i32, i32
  }
  func.func @transform_2(%arg0: i32) -> (i32, i32) {
    %c0_i32 = arith.constant 0 : i32
    %c0_i32_0 = arith.constant 0 : i32
    return %arg0, %c0_i32 : i32, i32
  }
  func.func @transform_3(%arg0: i32) -> (i32, i32) {
    %c0_i32 = arith.constant 0 : i32
    %c0_i32_0 = arith.constant 0 : i32
    return %arg0, %c0_i32 : i32, i32
  }
}

</mosaic_0001>

<bundles_post_ra>
// kernel: tpu_custom_call.1
= control target key start
LH: loop header
LB: loop body
LE: loop exit
PB: predicated region body
PF: predicated region fallthrough
CT: control target
= control target key end

     0   :  { %10 = vsyncpa [#allocation5], 0  ;;  %s156_s0 = inlined_call_operand.<no memory space> [shape: f32[1,1], index: 0, kind: input, shape index: {}]   ;;  %s157_s1 = inlined_call_operand.<no memory space> [shape: f32[1,1], index: 1, kind: input, shape index: {}]   ;;  %s158_s2 = inlined_call_operand.hbm [shape: f32[4,1024], index: 2, kind: input, shape index: {}]   ;;  %s159_s3 = inlined_call_operand.hbm [shape: f32[4,1024], index: 3, kind: output, shape index: {}]  }
   0x1   :  { %11 = vsyncpa [#allocation6], 0  ;;  %s21_s14 = sshll.u32 %s158_s2, 4  ;;  %s122_s15 = smov [#allocation4]   ;;  %s22_s14 = int_to_ptr.hbm [resolvable:$true] %s21_s14 }
   0x2   :  { %s23_s16 = sshll.u32 %s122_s15, 4  ;;  %s24_s16 = int_to_ptr.vmem [resolvable:$true] %s23_s16 }
   0x3   :  { %26 = dma.hbm_to_vmem [thread:$0]  %s22_s14, 512, %s24_s16, [#allocation5]  }
   0x4   :  { %118 = dma.done.wait [#allocation5], 512  }
   0x5   :  { %119 = vsyncadd [#allocation5], 4294966784  ;;  %v37_v0 = vstv %s156_s0  ;;  %v33_v1 = vld [vmem:[#allocation4] sm:$0xff]  ;;  %v42_v2 = vstv %s157_s1  ;;  %v34_v3 = vld [vmem:[#allocation4 + $0x8] sm:$0xff]  ;;  %s123_s2 = smov [#allocation7]   ;;  %s58_s0 = sshll.u32 %s159_s3, 4  ;;  %s59_s0 = int_to_ptr.hbm [resolvable:$true] %s58_s0 }
   0x6   :  { %v35_v4 = vld [vmem:[#allocation4 + $0x10] sm:$0xff]  ;;  %v38_v5 = vmul.f32 %v37_v0, %v33_v1  ;;  %v39_v6 = vmul.f32 %v37_v0, %v34_v3  ;;  %v36_v8 = vld [vmem:[#allocation4 + $0x18] sm:$0xff]  ;;  %s56_s21 = sshll.u32 %s123_s2, 4  ;;  %s57_s21 = int_to_ptr.vmem [resolvable:$true] %s56_s21 }
   0x7   :  { %v40_v7 = vmul.f32 %v37_v0, %v35_v4  ;;  %v41_v9 = vmul.f32 %v37_v0, %v36_v8 }
   0x8   :  { %v43_v10 = vadd.f32 %v42_v2, %v38_v5  ;;  %v44_v11 = vadd.f32 %v42_v2, %v39_v6 }
   0x9   :  { %v45_v12 = vadd.f32 %v42_v2, %v40_v7  ;;  %v46_v13 = vadd.f32 %v42_v2, %v41_v9 }
   0xa   :  { %47 = vst [vmem:[#allocation7] sm:$0xff] %v43_v10 }
   0xb   :  { %48 = vst [vmem:[#allocation7 + $0x8] sm:$0xff] %v44_v11 }
   0xc   :  { %49 = vst [vmem:[#allocation7 + $0x10] sm:$0xff] %v45_v12 }
   0xd   :  { %50 = vst [vmem:[#allocation7 + $0x18] sm:$0xff] %v46_v13 }
   0xe   :  { %61 = dma.vmem_to_hbm [thread:$0]  %s57_s21, 512, %s59_s0, [#allocation6]  }
   0xf   :  { %120 = dma.done.wait [#allocation6], 512  }
  0x10   :  { %121 = vsyncadd [#allocation6], 4294966784 }
  0x11   :  { %66 = vsyncpa [#allocation5], 1 }
  0x12   :  { %67 = vsyncpa [#allocation6], 1 }

</bundles_post_ra>
